<compile_context>
chip_gen: v5e
topology: v5e:2x2
jax: 0.10.0
libtpu: 0.0.40
codegen_flags: <defaults>
</compile_context>

<pallas_src>
import functools

import jax
import jax.numpy as jnp
from jax.experimental import pallas as pl
from jax.experimental.pallas import tpu as pltpu

LANE = 128
MAX_TILE_M = 8192           # rows per grid step (4 MiB f32 per input block)
MAX_CORES = 2               # v7x has 2 TensorCores; harmless (serial) elsewhere
VMEM_LIMIT_BYTES = 48 * 1024 * 1024  # fits v5e/v6e (128 MiB) and v7x (64 MiB) physical


def _round_up(x: int, m: int) -> int:
    return ((x + m - 1) // m) * m


def _bell_loss_kernel(yhat_ref, y_ref, out_ref, *, neg_inv_two_sita2, acc_rows):
    j = pl.program_id(1)

    @pl.when(j == 0)
    def _init():
        out_ref[...] = jnp.zeros_like(out_ref)

    # Inputs arrive in native dtype; compute in f32.
    yh = yhat_ref[...].astype(jnp.float32)
    yy = y_ref[...].astype(jnp.float32)
    d = yy - yh
    # Sign folded into the constant; exp runs on the EUP slot.
    e = jnp.exp((d * d) * neg_inv_two_sita2)

    # Pure-VPU partial reduction: (tile_m, 128) -> (tile_m/acc_rows, acc_rows, 128)
    # -> (acc_rows, 128).  Cross-lane/cross-sublane collapse happens only in the
    # wrapper, once per call.
    partial = e.reshape(-1, acc_rows, LANE).sum(axis=0)
    out_ref[...] += partial[None, :, :]


def bell_loss(y_hat, y, gama: float, sita: float):
    """mean(gama * (1 - exp(-((y - y_hat)^2) / (2 * sita^2)))) via Pallas."""
    assert y_hat.shape == y.shape, "y_hat and y must have the same shape"
    n = int(y_hat.size)
    assert n > 0

    yh = y_hat.reshape(-1)
    yy = y.reshape(-1)

    # Sublane packing: 8 rows for 32-bit, 16 for 16-bit, 32 for 8-bit dtypes.
    itemsize = jnp.dtype(y_hat.dtype).itemsize
    row_align = max(8, 32 // itemsize)

    rows_needed = pl.cdiv(n, LANE)
    rows_aligned = _round_up(rows_needed, row_align)
    tile_m = min(MAX_TILE_M, rows_aligned)          # multiple of row_align
    num_tiles = pl.cdiv(rows_aligned, tile_m)

    cores = MAX_CORES if num_tiles >= MAX_CORES else 1
    tiles_per_core = pl.cdiv(num_tiles, cores)
    total_rows = cores * tiles_per_core * tile_m
    total_elems = total_rows * LANE
    pad_elems = total_elems - n                     # each padded elem adds exp(0)=1

    if pad_elems:
        yh = jnp.pad(yh, (0, pad_elems))
        yy = jnp.pad(yy, (0, pad_elems))
    yh2 = yh.reshape(total_rows, LANE)
    yy2 = yy.reshape(total_rows, LANE)

    # Wider accumulator (more ILP in the add chain) when the tile allows it.
    if tile_m % 32 == 0:
        acc_rows = 32
    elif tile_m % 16 == 0:
        acc_rows = 16
    else:
        acc_rows = 8

    sita_f = float(sita)
    kernel = functools.partial(
        _bell_loss_kernel,
        neg_inv_two_sita2=-1.0 / (2.0 * sita_f * sita_f),
        acc_rows=acc_rows,
    )

    partials = pl.pallas_call(
        kernel,
        out_shape=jax.ShapeDtypeStruct((cores, acc_rows, LANE), jnp.float32),
        grid_spec=pltpu.PrefetchScalarGridSpec(
            num_scalar_prefetch=0,
            grid=(cores, tiles_per_core),
            in_specs=[
                pl.BlockSpec((tile_m, LANE),
                             lambda c, j: (c * tiles_per_core + j, 0)),
                pl.BlockSpec((tile_m, LANE),
                             lambda c, j: (c * tiles_per_core + j, 0)),
            ],
            # Per-core resident accumulator block (lane-dense last dim = 128).
            out_specs=pl.BlockSpec((1, acc_rows, LANE), lambda c, j: (c, 0, 0)),
        ),
        compiler_params=pltpu.CompilerParams(
            dimension_semantics=("parallel", "arbitrary"),
            vmem_limit_bytes=VMEM_LIMIT_BYTES,
        ),
    )(yh2, yy2)

    # Final tiny reduction + affine in the wrapper.  Padded elements each
    # contributed exactly 1.0 (exp(0)); subtract them before dividing by the
    # true element count.
    s = jnp.sum(partials)
    return jnp.float32(gama) * (1.0 - (s - jnp.float32(pad_elems)) / jnp.float32(n))


def _reference(y_hat, y, gama, sita):
    return jnp.mean(gama * (1.0 - jnp.exp(-((y - y_hat) ** 2) / (2.0 * sita ** 2))))


if __name__ == "__main__":
    # Deterministic "parameters" of Bell_loss.__init__
    gama = 2.0
    sita = 0.5

    key = jax.random.PRNGKey(0)

    # Test 1: small NCHW-shaped inputs, lane/sublane aligned (2048 elements).
    k1, k2, k3, k4 = jax.random.split(key, 4)
    shape = (2, 4, 16, 16)  # B, C, H, W
    y_hat = jax.random.normal(k1, shape, dtype=jnp.float32)
    y = jax.random.normal(k2, shape, dtype=jnp.float32)
    loss = jax.block_until_ready(bell_loss(y_hat, y, gama, sita))
    ref = _reference(y_hat, y, gama, sita)
    assert jnp.allclose(loss, ref, rtol=1e-5, atol=1e-6), (loss, ref)

    # Test 2: ragged element count (exercises pad-and-correct path).
    shape2 = (2, 3, 17, 13)  # 1326 elements, not a multiple of 8*128
    y_hat2 = jax.random.normal(k3, shape2, dtype=jnp.float32)
    y2 = jax.random.normal(k4, shape2, dtype=jnp.float32)
    loss2 = jax.block_until_ready(bell_loss(y_hat2, y2, gama, sita))
    ref2 = _reference(y_hat2, y2, gama, sita)
    assert jnp.allclose(loss2, ref2, rtol=1e-5, atol=1e-6), (loss2, ref2)

    print("KERNEL_OK")
</pallas_src>

<mosaic_0001>
module attributes {stable_mosaic.version = 11 : i64} {
  func.func @_bell_loss_kernel(%arg0: i32, %arg1: i32, %arg2: memref<16x128xf32, #tpu.memory_space<vmem>>, %arg3: memref<16x128xf32, #tpu.memory_space<vmem>>, %arg4: memref<1x16x128xf32, #tpu.memory_space<vmem>>) attributes {dimension_semantics = [#tpu.dimension_semantics<parallel>, #tpu.dimension_semantics<arbitrary>], iteration_bounds = array<i64: 1, 1>, scalar_prefetch = 0 : i64, scratch_operands = 0 : i64, tpu.core_type = #tpu.core_type<tc>, window_params = [{transform_indices = @transform_0, window_bounds = array<i64: 16, 128>}, {transform_indices = @transform_1, window_bounds = array<i64: 16, 128>}, {transform_indices = @transform_2, window_bounds = array<i64: 1, 16, 128>}]} {
    %c0_i32 = arith.constant 0 : i32
    %0 = arith.cmpi eq, %arg1, %c0_i32 : i32
    %1 = arith.extui %0 : i1 to i32
    %c0_i32_0 = arith.constant 0 : i32
    %2 = arith.cmpi ne, %1, %c0_i32_0 : i32
    scf.if %2 {
      %cst_11 = arith.constant 0.000000e+00 : f32
      %16 = vector.broadcast %cst_11 : f32 to vector<1x16x128xf32>
      %c0_12 = arith.constant 0 : index
      %c0_13 = arith.constant 0 : index
      %c0_14 = arith.constant 0 : index
      %17 = vector.load %arg4[%c0_12, %c0_13, %c0_14] : memref<1x16x128xf32, #tpu.memory_space<vmem>>, vector<1x16x128xf32>
      tpu.vector_store %arg4[%c0_12, %c0_13, %c0_14], %16 {strides = array<i32>} : memref<1x16x128xf32, #tpu.memory_space<vmem>>, vector<1x16x128xf32>,
    } else {
    }
    %c0 = arith.constant 0 : index
    %c0_1 = arith.constant 0 : index
    %3 = vector.load %arg2[%c0, %c0_1] : memref<16x128xf32, #tpu.memory_space<vmem>>, vector<16x128xf32>
    %c0_2 = arith.constant 0 : index
    %c0_3 = arith.constant 0 : index
    %4 = vector.load %arg3[%c0_2, %c0_3] : memref<16x128xf32, #tpu.memory_space<vmem>>, vector<16x128xf32>
    %5 = arith.subf %4, %3 : vector<16x128xf32>
    %6 = arith.mulf %5, %5 : vector<16x128xf32>
    %cst = arith.constant -2.000000e+00 : f32
    %7 = vector.broadcast %cst : f32 to vector<16x128xf32>
    %8 = arith.mulf %6, %7 : vector<16x128xf32>
    %9 = math.exp %8 : vector<16x128xf32>
    %10 = vector.shape_cast %9 : vector<16x128xf32> to vector<1x16x128xf32>
    %cst_4 = arith.constant dense<0.000000e+00> : vector<16x128xf32>
    %11 = vector.multi_reduction <add>, %10, %cst_4 [0] : vector<1x16x128xf32> to vector<16x128xf32>
    %c0_5 = arith.constant 0 : index
    %c0_6 = arith.constant 0 : index
    %c0_7 = arith.constant 0 : index
    %12 = vector.load %arg4[%c0_5, %c0_6, %c0_7] : memref<1x16x128xf32, #tpu.memory_space<vmem>>, vector<1x16x128xf32>
    %13 = vector.shape_cast %11 : vector<16x128xf32> to vector<1x16x128xf32>
    %14 = arith.addf %12, %13 : vector<1x16x128xf32>
    %c0_8 = arith.constant 0 : index
    %c0_9 = arith.constant 0 : index
    %c0_10 = arith.constant 0 : index
    %15 = vector.load %arg4[%c0_8, %c0_9, %c0_10] : memref<1x16x128xf32, #tpu.memory_space<vmem>>, vector<1x16x128xf32>
    tpu.vector_store %arg4[%c0_8, %c0_9, %c0_10], %14 {strides = array<i32>} : memref<1x16x128xf32, #tpu.memory_space<vmem>>, vector<1x16x128xf32>,
    return
  }
  func.func @transform_0(%arg0: i32, %arg1: i32) -> (i32, i32) {
    %c1_i32 = arith.constant 1 : i32
    %0 = arith.muli %arg0, %c1_i32 : i32
    %1 = arith.addi %0, %arg1 : i32
    %c0_i32 = arith.constant 0 : i32
    %c0_i32_0 = arith.constant 0 : i32
    return %1, %c0_i32 : i32, i32
  }
  func.func @transform_1(%arg0: i32, %arg1: i32) -> (i32, i32) {
    %c1_i32 = arith.constant 1 : i32
    %0 = arith.muli %arg0, %c1_i32 : i32
    %1 = arith.addi %0, %arg1 : i32
    %c0_i32 = arith.constant 0 : i32
    %c0_i32_0 = arith.constant 0 : i32
    return %1, %c0_i32 : i32, i32
  }
  func.func @transform_2(%arg0: i32, %arg1: i32) -> (i32, i32, i32) {
    %c0_i32 = arith.constant 0 : i32
    %c0_i32_0 = arith.constant 0 : i32
    %c0_i32_1 = arith.constant 0 : i32
    return %arg0, %c0_i32, %c0_i32_0 : i32, i32, i32
  }
}

</mosaic_0001>

<bundles_post_ra>
// kernel: tpu_custom_call.1
= control target key start
LH: loop header
LB: loop body
LE: loop exit
PB: predicated region body
PF: predicated region fallthrough
CT: control target
= control target key end

     0   :  { %7 = vsyncpa [#allocation3], 0  ;;  %s230_s0 = inlined_call_operand.hbm [shape: f32[16,128], index: 0, kind: input, shape index: {}]   ;;  %s231_s1 = inlined_call_operand.hbm [shape: f32[16,128], index: 1, kind: input, shape index: {}]   ;;  %s232_s2 = inlined_call_operand.hbm [shape: f32[1,16,128], index: 2, kind: output, shape index: {}]  }
   0x1   :  { %8 = vsyncpa [#allocation6], 0 }
   0x2   :  { %9 = vsyncpa [#allocation4], 0  ;;  %s18_s11 = sshll.u32 %s230_s0, 4  ;;  %s192_s12 = smov [#allocation2]   ;;  %s19_s11 = int_to_ptr.hbm [resolvable:$true] %s18_s11 }
   0x3   :  { %s20_s13 = sshll.u32 %s192_s12, 4  ;;  %s35_s16 = sshll.u32 %s231_s1, 4  ;;  %s21_s13 = int_to_ptr.vmem [resolvable:$true] %s20_s13  ;;  %s36_s16 = int_to_ptr.hbm [resolvable:$true] %s35_s16 }
   0x4   :  { %s193_s17 = smov 128   ;;  %s194_s18 = smov 8  }
   0x5   :  { %26 = dma.hbm_to_vmem [thread:$0]  %s19_s11, 256, %s21_s13, [#allocation3], %s193_s17, %s193_s17, %s194_s18  }
   0x6   :  { %s195_s19 = smov [#allocation5]  }
   0x7   :  { %s37_s20 = sshll.u32 %s195_s19, 4  ;;  %s38_s20 = int_to_ptr.vmem [resolvable:$true] %s37_s20 }
   0x8   :  { %43 = dma.hbm_to_vmem [thread:$0]  %s36_s16, 256, %s38_s20, [#allocation6], %s193_s17, %s193_s17, %s194_s18  }
   0x9   :  { %186 = dma.done.wait [#allocation3], 256  }
   0xa   :  { %187 = vsyncadd [#allocation3], 4294967040 }
   0xb   :  { %188 = dma.done.wait [#allocation6], 256  }
   0xc   :  { %189 = vsyncadd [#allocation6], 4294967040  ;;  %v62_v0 = vld [vmem:[#allocation2] sm:$0xff]  ;;  %v64_v1 = vld [vmem:[#allocation5] sm:$0xff]  ;;  %s196_s0 = smov [#allocation7]   ;;  %s90_s23 = sshll.u32 %s232_s2, 4  ;;  %s91_s23 = int_to_ptr.hbm [resolvable:$true] %s90_s23 }
   0xd   :  { %v63_v2 = vld [vmem:[#allocation2 + $0x8] sm:$0xff]  ;;  %v66_v3 = vsub.f32 %v64_v1, %v62_v0  ;;  %v65_v4 = vld [vmem:[#allocation5 + $0x8] sm:$0xff]  ;;  %s88_s1 = sshll.u32 %s196_s0, 4  ;;  %s89_s1 = int_to_ptr.vmem [resolvable:$true] %s88_s1 }
   0xe   :  { %v67_v5 = vsub.f32 %v65_v4, %v63_v2 }
   0xf   :  { %v68_v6 = vmul.f32 %v66_v3, %v66_v3 }
  0x10   :  { %v69_v7 = vmul.f32 %v67_v5, %v67_v5 }
  0x11   :  { %v70_v8 = vmul.f32 -2.0, %v68_v6 }
  0x12   :  { %v71_v9 = vmul.f32 -2.0, %v69_v7 }
  0x13   :  { %v72_v10 = vmul.f32 1.442695, %v70_v8 }
  0x14   :  { %v74_v11 = vmul.f32 1.442695, %v71_v9 }
  0x15   :  { %110 = vpow2.f32 %v72_v10 }
  0x16   :  { %112 = vpow2.f32 %v74_v11 }
  0x1b   :  { %v111_v12 = vpop.eup %110 }
  0x1c   :  { %v113_v13 = vpop.eup %112  ;;  %82 = vst [vmem:[#allocation7] sm:$0xff] %v111_v12 }
  0x1d   :  { %83 = vst [vmem:[#allocation7 + $0x8] sm:$0xff] %v113_v13 }
  0x1e   :  { %96 = dma.vmem_to_hbm [thread:$0]  %s89_s1, 256, %s91_s23, [#allocation4], %s193_s17, %s193_s17, %s194_s18  }
  0x1f   :  { %190 = dma.done.wait [#allocation4], 256  }
  0x20   :  { %191 = vsyncadd [#allocation4], 4294967040 }
  0x21   :  { %101 = vsyncpa [#allocation3], 1 }
  0x22   :  { %102 = vsyncpa [#allocation6], 1 }
  0x23   :  { %103 = vsyncpa [#allocation4], 1 }

</bundles_post_ra>
